<compile_context>
chip_gen: v7x
topology: tpu7x:2x2x1
jax: 0.10.0
libtpu: 0.0.40
codegen_flags: <defaults>
</compile_context>

<pallas_src>
import numpy as np
import jax
import jax.numpy as jnp
from jax.experimental import pallas as pl
from jax.experimental.pallas import tpu as pltpu


# ----------------------------------------------------------------------------
# Schedule (numpy, matches get_beta_schedule('linear') + buffers in __init__)
# ----------------------------------------------------------------------------
def make_schedule(timesteps, beta_start=1e-4, beta_end=2e-2):
    betas = np.linspace(beta_start, beta_end, timesteps, dtype=np.float64)
    alphas = 1.0 - betas
    alphas_cumprod = np.cumprod(alphas, axis=0)
    alphas_cumprod_prev = np.append(1.0, alphas_cumprod[:-1])
    posterior_variance = betas * (1.0 - alphas_cumprod_prev) / (1.0 - alphas_cumprod)
    sched = dict(
        sqrt_alphas_cumprod=np.sqrt(alphas_cumprod),
        sqrt_one_minus_alphas_cumprod=np.sqrt(1.0 - alphas_cumprod),
        sqrt_recip_alphas_cumprod=np.sqrt(1.0 / alphas_cumprod),
        sqrt_recipm1_alphas_cumprod=np.sqrt(1.0 / alphas_cumprod - 1.0),
        posterior_log_variance_clipped=np.log(np.maximum(posterior_variance, 1e-20)),
        posterior_mean_coef1=betas * np.sqrt(alphas_cumprod_prev) / (1.0 - alphas_cumprod),
        posterior_mean_coef2=(1.0 - alphas_cumprod_prev) * np.sqrt(alphas) / (1.0 - alphas_cumprod),
    )
    return {k: jnp.asarray(v, dtype=jnp.float32) for k, v in sched.items()}


# Per-batch scalar coefficients (masks / sigma pre-folded in the XLA glue):
#   0: sqrt_alphas_cumprod[t]
#   1: sqrt_one_minus_alphas_cumprod[t]
#   2: sqrt_alphas_cumprod[t-1]*m + (1-m)        (m = 1[t-1 >= 0])
#   3: sqrt_one_minus_alphas_cumprod[t-1]*m
#   4: sqrt_recip_alphas_cumprod[t]
#   5: sqrt_recipm1_alphas_cumprod[t]
#   6: posterior_mean_coef1[t]
#   7: posterior_mean_coef2[t]
#   8: 1[t != 0] * exp(0.5 * posterior_log_variance_clipped[t])
N_COEF = 9


# ----------------------------------------------------------------------------
# Pallas kernel: one (batch b, spatial tile i) block of shape (C, HW_TILE)
# ----------------------------------------------------------------------------
def _diffusion_kernel(coef_ref, hw_ref,                       # SMEM scalars
                      w1_ref, w2_ref, bias_ref,               # small resident VMEM
                      x_ref, cond_ref, noise_ref, noise2_ref,  # bf16 streaming tiles
                      x_tp1_ref, x_t_gt_ref, x_t_ref, loss_ref):
    b = pl.program_id(0)
    ti = pl.program_id(1)
    tile = x_ref.shape[-1]

    # bf16 -> f32 immediately after load (v5e VPU has no bf16; cast hides under DMA)
    x = x_ref[...].astype(jnp.float32)        # (C, tile)
    cond = cond_ref[...].astype(jnp.float32)
    n = noise_ref[...].astype(jnp.float32)
    n2 = noise2_ref[...].astype(jnp.float32)

    # per-batch scalars from SMEM
    c_ac_t = coef_ref[0, b]
    c_1mac_t = coef_ref[1, b]
    c_x_tm1 = coef_ref[2, b]
    c_n_tm1 = coef_ref[3, b]
    c_recip = coef_ref[4, b]
    c_recipm1 = coef_ref[5, b]
    c_pm1 = coef_ref[6, b]
    c_pm2 = coef_ref[7, b]
    c_sigma = coef_ref[8, b]

    # --- q_sample at t and at t-1 (t-1 mask blend pre-folded into c_x_tm1/c_n_tm1)
    x_tp1 = c_ac_t * x + c_1mac_t * n
    x_tm1 = c_x_tm1 * x + c_n_tm1 * n

    # --- denoise_fn stand-in: 1x1 channel mix, contraction over C only
    noise_pred = (jnp.dot(w1_ref[...], x_tp1, preferred_element_type=jnp.float32)
                  + jnp.dot(w2_ref[...], cond, preferred_element_type=jnp.float32)
                  + bias_ref[...])

    # --- p_sample / p_mean_variance (clip_denoised=True)
    x_recon = jnp.clip(c_recip * x_tp1 - c_recipm1 * noise_pred, -1.0, 1.0)
    x_t_pred = c_pm1 * x_recon + c_pm2 * x_tp1 + c_sigma * n2

    # --- bf16 lane-dense stores
    x_tp1_ref[...] = x_tp1.astype(x_tp1_ref.dtype)
    x_t_gt_ref[...] = x_tm1.astype(x_t_gt_ref.dtype)
    x_t_ref[...] = x_t_pred.astype(x_t_ref.dtype)

    # --- l1 partial: mask out HW padding, reduce lanes only -> (C, 1), f32
    col = jax.lax.broadcasted_iota(jnp.int32, (1, tile), 1) + ti * tile
    valid = (col < hw_ref[0]).astype(jnp.float32)
    loss_ref[...] = jnp.sum(jnp.abs(n - noise_pred) * valid, axis=1, keepdims=True)


# ----------------------------------------------------------------------------
# Generation-aware VMEM budgeting
# ----------------------------------------------------------------------------
def _vmem_capacity_bytes():
    try:
        return int(pltpu.get_tpu_info().vmem_capacity_bytes)
    except Exception:
        return 64 << 20   # conservative fallback (v7x per-TensorCore)


def _choose_hw_tile(hw_pad, c, io_bytes):
    """Largest multiple-of-128 spatial tile fitting the per-generation VMEM budget."""
    vmem_cap = _vmem_capacity_bytes()
    budget = min(vmem_cap // 2, 48 << 20)          # headroom for Mosaic scratch
    # rough per-lane VMEM bytes: 7 double-buffered bf16 streams (sublane-padded)
    # + ~8 whole-tile f32 intermediates at <=8 rows
    sub_pad = 16 if io_bytes < 4 else 8
    per_lane = 7 * 2 * sub_pad * io_bytes + 8 * max(c, 8) * 4
    tile = min(hw_pad, max(128, (budget // per_lane) // 128 * 128))
    # keep >= 2 spatial tiles when possible (2 TensorCores on v7x, even at B=1)
    if hw_pad // tile < 2 and hw_pad >= 256:
        tile = max(128, (hw_pad // 2) // 128 * 128)
    while hw_pad % tile != 0:                      # hw_pad is a multiple of 128
        tile -= 128
    return tile


# ----------------------------------------------------------------------------
# Wrapper: coefficient folding, padding, pallas_call, loss reduction
# ----------------------------------------------------------------------------
def gaussian_diffusion_forward(img, cond, t, noise, noise2, sched, w1, w2, bias,
                               io_dtype=jnp.bfloat16):
    B, C, H, W = img.shape
    HW = H * W
    HW_pad = ((HW + 127) // 128) * 128
    io_bytes = jnp.dtype(io_dtype).itemsize

    x = img  # hparams['res_type'] = False -> no img2res / res2img

    # --- per-batch scalar coefficients, masks & sigma folded here (free in XLA)
    tm1 = jnp.maximum(t - 1, 0)
    tm1_mask = (t - 1 >= 0).astype(jnp.float32)
    nz_mask = (t != 0).astype(jnp.float32)
    coef = jnp.stack([
        sched['sqrt_alphas_cumprod'][t],
        sched['sqrt_one_minus_alphas_cumprod'][t],
        sched['sqrt_alphas_cumprod'][tm1] * tm1_mask + (1.0 - tm1_mask),
        sched['sqrt_one_minus_alphas_cumprod'][tm1] * tm1_mask,
        sched['sqrt_recip_alphas_cumprod'][t],
        sched['sqrt_recipm1_alphas_cumprod'][t],
        sched['posterior_mean_coef1'][t],
        sched['posterior_mean_coef2'][t],
        nz_mask * jnp.exp(0.5 * sched['posterior_log_variance_clipped'][t]),
    ], axis=0).astype(jnp.float32)                 # (N_COEF, B) -> SMEM
    hw_true = jnp.array([HW], dtype=jnp.int32)     # -> SMEM

    # --- (B, C, H, W) -> (B, C, HW_pad) bf16 (pad lanes masked out of the loss)
    def prep(a):
        a3 = a.reshape(B, C, HW).astype(io_dtype)
        if HW_pad != HW:
            a3 = jnp.pad(a3, ((0, 0), (0, 0), (0, HW_pad - HW)))
        return a3
    x3, cond3, n3, n23 = prep(x), prep(cond), prep(noise), prep(noise2)

    # --- denoise stand-in weights: plain (C, C), no kron block-diagonal
    w1f = w1.astype(jnp.float32)
    w2f = w2.astype(jnp.float32)
    bias_col = bias.astype(jnp.float32)[:, None]   # (C, 1)

    hw_tile = _choose_hw_tile(HW_pad, C, io_bytes)
    nt = HW_pad // hw_tile

    img_spec = pl.BlockSpec((None, C, hw_tile), lambda b, i: (b, 0, i))
    smem_spec = pl.BlockSpec(memory_space=pltpu.MemorySpace.SMEM)
    const_spec = lambda shape: pl.BlockSpec(shape, lambda b, i: (0,) * len(shape))

    grid_spec = pltpu.PrefetchScalarGridSpec(
        num_scalar_prefetch=0,
        grid=(B, nt),
        in_specs=[
            smem_spec,               # coef  (N_COEF, B)   SMEM scalars
            smem_spec,               # hw_true (1,)        SMEM scalar
            const_spec((C, C)),      # w1
            const_spec((C, C)),      # w2
            const_spec((C, 1)),      # bias
            img_spec,                # x
            img_spec,                # cond
            img_spec,                # noise
            img_spec,                # noise2
        ],
        out_specs=[
            img_spec,                                             # x_tp1_gt
            img_spec,                                             # x_t_gt
            img_spec,                                             # x_t_pred
            pl.BlockSpec((None, None, C, 1), lambda b, i: (b, i, 0, 0)),  # l1 partials
        ],
    )

    out_shape = (
        jax.ShapeDtypeStruct((B, C, HW_pad), io_dtype),
        jax.ShapeDtypeStruct((B, C, HW_pad), io_dtype),
        jax.ShapeDtypeStruct((B, C, HW_pad), io_dtype),
        jax.ShapeDtypeStruct((B, nt, C, 1), jnp.float32),
    )

    vmem_limit = min(_vmem_capacity_bytes() * 3 // 4, 96 << 20)   # ~48 MiB v7x, 96 MiB v5e/v6e

    x_tp1_3, x_tm1_3, x_t_3, loss_part = pl.pallas_call(
        _diffusion_kernel,
        grid_spec=grid_spec,
        out_shape=out_shape,
        compiler_params=pltpu.CompilerParams(
            # every grid step writes disjoint blocks -> both axes parallel
            dimension_semantics=("parallel", "parallel"),
            vmem_limit_bytes=vmem_limit),
    )(coef, hw_true, w1f, w2f, bias_col, x3, cond3, n3, n23)

    loss = jnp.sum(loss_part) / jnp.float32(B * C * HW)           # l1 mean (pad masked)

    def unprep(a):
        return a[..., :HW].reshape(B, C, H, W)

    ret = {'q': loss}
    return ret, (unprep(x_tp1_3), unprep(x_tm1_3), unprep(x_t_3)), t


# ----------------------------------------------------------------------------
# Pure-JAX reference (PyTorch semantics) for correctness check
# ----------------------------------------------------------------------------
def _reference_forward(img, cond, t, noise, noise2, sched, w1, w2, bias):
    B, C, H, W = img.shape

    def ext(a, tt):
        return a[tt].reshape(B, 1, 1, 1)

    x = img
    x_tp1 = ext(sched['sqrt_alphas_cumprod'], t) * x + \
        ext(sched['sqrt_one_minus_alphas_cumprod'], t) * noise
    tm1 = jnp.maximum(t - 1, 0)
    m = (t - 1 >= 0).astype(jnp.float32).reshape(B, 1, 1, 1)
    x_tm1 = (ext(sched['sqrt_alphas_cumprod'], tm1) * x +
             ext(sched['sqrt_one_minus_alphas_cumprod'], tm1) * noise) * m + x * (1.0 - m)
    noise_pred = (jnp.einsum('oc,bchw->bohw', w1, x_tp1)
                  + jnp.einsum('oc,bchw->bohw', w2, cond)
                  + bias.reshape(1, C, 1, 1))
    x_recon = ext(sched['sqrt_recip_alphas_cumprod'], t) * x_tp1 - \
        ext(sched['sqrt_recipm1_alphas_cumprod'], t) * noise_pred
    x_recon = jnp.clip(x_recon, -1.0, 1.0)
    model_mean = ext(sched['posterior_mean_coef1'], t) * x_recon + \
        ext(sched['posterior_mean_coef2'], t) * x_tp1
    nz = (t != 0).astype(jnp.float32).reshape(B, 1, 1, 1)
    x_t = model_mean + nz * jnp.exp(0.5 * ext(sched['posterior_log_variance_clipped'], t)) * noise2
    loss = jnp.mean(jnp.abs(noise - noise_pred))
    return loss, x_tp1, x_tm1, x_t


# ----------------------------------------------------------------------------
if __name__ == "__main__":
    B, C, H, W = 2, 4, 16, 16
    TIMESTEPS = 100

    key = jax.random.PRNGKey(0)
    k_img, k_cond, k_noise, k_noise2, k_t, k_w1, k_w2, k_b = jax.random.split(key, 8)

    img = jax.random.normal(k_img, (B, C, H, W), dtype=jnp.float32)
    cond = jax.random.normal(k_cond, (B, C, H, W), dtype=jnp.float32)
    noise = jax.random.normal(k_noise, (B, C, H, W), dtype=jnp.float32)
    noise2 = jax.random.normal(k_noise2, (B, C, H, W), dtype=jnp.float32)
    t = jax.random.randint(k_t, (B,), 0, TIMESTEPS)

    # deterministic stand-in denoise_fn parameters (1x1 channel mix)
    w1 = 0.1 * jax.random.normal(k_w1, (C, C), dtype=jnp.float32)
    w2 = 0.1 * jax.random.normal(k_w2, (C, C), dtype=jnp.float32)
    bias = 0.01 * jax.random.normal(k_b, (C,), dtype=jnp.float32)

    sched = make_schedule(TIMESTEPS)

    ret, (x_tp1, x_t_gt, x_t), t_out = gaussian_diffusion_forward(
        img, cond, t, noise, noise2, sched, w1, w2, bias)
    jax.block_until_ready((ret['q'], x_tp1, x_t_gt, x_t, t_out))

    assert x_tp1.shape == (B, C, H, W)
    assert x_t_gt.shape == (B, C, H, W)
    assert x_t.shape == (B, C, H, W)
    assert ret['q'].shape == ()
    assert bool(jnp.isfinite(ret['q']))

    # correctness check: reference consumes the same bf16-rounded inputs as the
    # kernel (bf16 streaming I/O); intermediate math in both is f32.
    def bf16_round(a):
        return a.astype(jnp.bfloat16).astype(jnp.float32)

    loss_r, x_tp1_r, x_tm1_r, x_t_r = _reference_forward(
        bf16_round(img), bf16_round(cond), t, bf16_round(noise), bf16_round(noise2),
        sched, w1, w2, bias)

    def to_np(a):
        return np.asarray(a.astype(jnp.float32))

    # tensors are stored as bf16 -> allow bf16 output-rounding tolerance
    np.testing.assert_allclose(to_np(x_tp1), np.asarray(x_tp1_r), rtol=1e-2, atol=2e-2)
    np.testing.assert_allclose(to_np(x_t_gt), np.asarray(x_tm1_r), rtol=1e-2, atol=2e-2)
    np.testing.assert_allclose(to_np(x_t), np.asarray(x_t_r), rtol=1e-2, atol=2e-2)
    # loss path is f32 end-to-end
    np.testing.assert_allclose(np.asarray(ret['q']), np.asarray(loss_r), rtol=2e-3, atol=1e-4)

    print("KERNEL_OK")
</pallas_src>

<mosaic_0001>
module attributes {stable_mosaic.version = 11 : i64} {
  func.func @_diffusion_kernel(%arg0: i32, %arg1: i32, %arg2: memref<9x2xf32, #tpu.memory_space<smem>>, %arg3: memref<1xi32, #tpu.memory_space<smem>>, %arg4: memref<4x4xf32, #tpu.memory_space<vmem>>, %arg5: memref<4x4xf32, #tpu.memory_space<vmem>>, %arg6: memref<4x1xf32, #tpu.memory_space<vmem>>, %arg7: memref<1x4x128xbf16, #tpu.memory_space<vmem>>, %arg8: memref<1x4x128xbf16, #tpu.memory_space<vmem>>, %arg9: memref<1x4x128xbf16, #tpu.memory_space<vmem>>, %arg10: memref<1x4x128xbf16, #tpu.memory_space<vmem>>, %arg11: memref<1x4x128xbf16, #tpu.memory_space<vmem>>, %arg12: memref<1x4x128xbf16, #tpu.memory_space<vmem>>, %arg13: memref<1x4x128xbf16, #tpu.memory_space<vmem>>, %arg14: memref<1x1x4x1xf32, #tpu.memory_space<vmem>>) attributes {dimension_semantics = [#tpu.dimension_semantics<parallel>, #tpu.dimension_semantics<parallel>], iteration_bounds = array<i64: 2, 2>, scalar_prefetch = 0 : i64, scratch_operands = 0 : i64, tpu.core_type = #tpu.core_type<tc>, window_params = [{transform_indices = @transform_0, window_bounds = array<i64: 9, 2>}, {transform_indices = @transform_1, window_bounds = array<i64: 1>}, {pipeline_mode = #tpu.pipeline_mode<synchronous>, transform_indices = @transform_2, window_bounds = array<i64: 4, 4>}, {pipeline_mode = #tpu.pipeline_mode<synchronous>, transform_indices = @transform_3, window_bounds = array<i64: 4, 4>}, {pipeline_mode = #tpu.pipeline_mode<synchronous>, transform_indices = @transform_4, window_bounds = array<i64: 4, 1>}, {transform_indices = @transform_5, window_bounds = array<i64: 1, 4, 128>}, {transform_indices = @transform_6, window_bounds = array<i64: 1, 4, 128>}, {transform_indices = @transform_7, window_bounds = array<i64: 1, 4, 128>}, {transform_indices = @transform_8, window_bounds = array<i64: 1, 4, 128>}, {transform_indices = @transform_9, window_bounds = array<i64: 1, 4, 128>}, {transform_indices = @transform_10, window_bounds = array<i64: 1, 4, 128>}, {transform_indices = @transform_11, window_bounds = array<i64: 1, 4, 128>}, {transform_indices = @transform_12, window_bounds = array<i64: 1, 1, 4, 1>}]} {
    %c0 = arith.constant 0 : index
    %c0_0 = arith.constant 0 : index
    %c0_1 = arith.constant 0 : index
    %0 = vector.load %arg7[%c0, %c0_0, %c0_1] : memref<1x4x128xbf16, #tpu.memory_space<vmem>>, vector<1x4x128xbf16>
    %1 = vector.shape_cast %0 : vector<1x4x128xbf16> to vector<4x128xbf16>
    %2 = arith.extf %1 : vector<4x128xbf16> to vector<4x128xf32>
    %c0_2 = arith.constant 0 : index
    %c0_3 = arith.constant 0 : index
    %c0_4 = arith.constant 0 : index
    %3 = vector.load %arg8[%c0_2, %c0_3, %c0_4] : memref<1x4x128xbf16, #tpu.memory_space<vmem>>, vector<1x4x128xbf16>
    %4 = vector.shape_cast %3 : vector<1x4x128xbf16> to vector<4x128xbf16>
    %5 = arith.extf %4 : vector<4x128xbf16> to vector<4x128xf32>
    %c0_5 = arith.constant 0 : index
    %c0_6 = arith.constant 0 : index
    %c0_7 = arith.constant 0 : index
    %6 = vector.load %arg9[%c0_5, %c0_6, %c0_7] : memref<1x4x128xbf16, #tpu.memory_space<vmem>>, vector<1x4x128xbf16>
    %7 = vector.shape_cast %6 : vector<1x4x128xbf16> to vector<4x128xbf16>
    %8 = arith.extf %7 : vector<4x128xbf16> to vector<4x128xf32>
    %c0_8 = arith.constant 0 : index
    %c0_9 = arith.constant 0 : index
    %c0_10 = arith.constant 0 : index
    %9 = vector.load %arg10[%c0_8, %c0_9, %c0_10] : memref<1x4x128xbf16, #tpu.memory_space<vmem>>, vector<1x4x128xbf16>
    %10 = vector.shape_cast %9 : vector<1x4x128xbf16> to vector<4x128xbf16>
    %11 = arith.extf %10 : vector<4x128xbf16> to vector<4x128xf32>
    %c0_11 = arith.constant 0 : index
    %12 = arith.index_cast %arg0 : i32 to index
    %13 = memref.load %arg2[%c0_11, %12] : memref<9x2xf32, #tpu.memory_space<smem>>
    %c1 = arith.constant 1 : index
    %14 = arith.index_cast %arg0 : i32 to index
    %15 = memref.load %arg2[%c1, %14] : memref<9x2xf32, #tpu.memory_space<smem>>
    %c2 = arith.constant 2 : index
    %16 = arith.index_cast %arg0 : i32 to index
    %17 = memref.load %arg2[%c2, %16] : memref<9x2xf32, #tpu.memory_space<smem>>
    %c3 = arith.constant 3 : index
    %18 = arith.index_cast %arg0 : i32 to index
    %19 = memref.load %arg2[%c3, %18] : memref<9x2xf32, #tpu.memory_space<smem>>
    %c4 = arith.constant 4 : index
    %20 = arith.index_cast %arg0 : i32 to index
    %21 = memref.load %arg2[%c4, %20] : memref<9x2xf32, #tpu.memory_space<smem>>
    %c5 = arith.constant 5 : index
    %22 = arith.index_cast %arg0 : i32 to index
    %23 = memref.load %arg2[%c5, %22] : memref<9x2xf32, #tpu.memory_space<smem>>
    %c6 = arith.constant 6 : index
    %24 = arith.index_cast %arg0 : i32 to index
    %25 = memref.load %arg2[%c6, %24] : memref<9x2xf32, #tpu.memory_space<smem>>
    %c7 = arith.constant 7 : index
    %26 = arith.index_cast %arg0 : i32 to index
    %27 = memref.load %arg2[%c7, %26] : memref<9x2xf32, #tpu.memory_space<smem>>
    %c8 = arith.constant 8 : index
    %28 = arith.index_cast %arg0 : i32 to index
    %29 = memref.load %arg2[%c8, %28] : memref<9x2xf32, #tpu.memory_space<smem>>
    %30 = vector.broadcast %13 : f32 to vector<4x128xf32>
    %31 = arith.mulf %30, %2 : vector<4x128xf32>
    %32 = vector.broadcast %15 : f32 to vector<4x128xf32>
    %33 = arith.mulf %32, %8 : vector<4x128xf32>
    %34 = arith.addf %31, %33 : vector<4x128xf32>
    %35 = vector.broadcast %17 : f32 to vector<4x128xf32>
    %36 = arith.mulf %35, %2 : vector<4x128xf32>
    %37 = vector.broadcast %19 : f32 to vector<4x128xf32>
    %38 = arith.mulf %37, %8 : vector<4x128xf32>
    %39 = arith.addf %36, %38 : vector<4x128xf32>
    %c0_12 = arith.constant 0 : index
    %c0_13 = arith.constant 0 : index
    %40 = vector.load %arg4[%c0_12, %c0_13] : memref<4x4xf32, #tpu.memory_space<vmem>>, vector<4x4xf32>
    %cst = arith.constant dense<0.000000e+00> : vector<4x128xf32>
    %41 = tpu.matmul %40, %34, %cst {dimension_numbers = #tpu.dot_dimension_numbers<[1], [0], [0], [1], [0, 0, 1, 1], [], []>} : vector<4x4xf32>, vector<4x128xf32>, vector<4x128xf32> -> vector<4x128xf32>
    %c0_14 = arith.constant 0 : index
    %c0_15 = arith.constant 0 : index
    %42 = vector.load %arg5[%c0_14, %c0_15] : memref<4x4xf32, #tpu.memory_space<vmem>>, vector<4x4xf32>
    %cst_16 = arith.constant dense<0.000000e+00> : vector<4x128xf32>
    %43 = tpu.matmul %42, %5, %cst_16 {dimension_numbers = #tpu.dot_dimension_numbers<[1], [0], [0], [1], [0, 0, 1, 1], [], []>} : vector<4x4xf32>, vector<4x128xf32>, vector<4x128xf32> -> vector<4x128xf32>
    %44 = arith.addf %41, %43 : vector<4x128xf32>
    %c0_17 = arith.constant 0 : index
    %c0_18 = arith.constant 0 : index
    %45 = vector.load %arg6[%c0_17, %c0_18] : memref<4x1xf32, #tpu.memory_space<vmem>>, vector<4x1xf32>
    %46 = vector.broadcast %45 : vector<4x1xf32> to vector<4x128xf32>
    %47 = arith.addf %44, %46 : vector<4x128xf32>
    %48 = vector.broadcast %21 : f32 to vector<4x128xf32>
    %49 = arith.mulf %48, %34 : vector<4x128xf32>
    %50 = vector.broadcast %23 : f32 to vector<4x128xf32>
    %51 = arith.mulf %50, %47 : vector<4x128xf32>
    %52 = arith.subf %49, %51 : vector<4x128xf32>
    %cst_19 = arith.constant -1.000000e+00 : f32
    %cst_20 = arith.constant 1.000000e+00 : f32
    %53 = vector.broadcast %cst_19 : f32 to vector<4x128xf32>
    %54 = arith.maximumf %53, %52 : vector<4x128xf32>
    %55 = vector.broadcast %cst_20 : f32 to vector<4x128xf32>
    %56 = arith.minimumf %55, %54 : vector<4x128xf32>
    %57 = vector.broadcast %25 : f32 to vector<4x128xf32>
    %58 = arith.mulf %57, %56 : vector<4x128xf32>
    %59 = vector.broadcast %27 : f32 to vector<4x128xf32>
    %60 = arith.mulf %59, %34 : vector<4x128xf32>
    %61 = arith.addf %58, %60 : vector<4x128xf32>
    %62 = vector.broadcast %29 : f32 to vector<4x128xf32>
    %63 = arith.mulf %62, %11 : vector<4x128xf32>
    %64 = arith.addf %61, %63 : vector<4x128xf32>
    %65 = arith.truncf %34 : vector<4x128xf32> to vector<4x128xbf16>
    %c0_21 = arith.constant 0 : index
    %c0_22 = arith.constant 0 : index
    %c0_23 = arith.constant 0 : index
    %66 = vector.load %arg11[%c0_21, %c0_22, %c0_23] : memref<1x4x128xbf16, #tpu.memory_space<vmem>>, vector<1x4x128xbf16>
    %67 = vector.shape_cast %66 : vector<1x4x128xbf16> to vector<4x128xbf16>
    %68 = vector.shape_cast %65 : vector<4x128xbf16> to vector<1x4x128xbf16>
    tpu.vector_store %arg11[%c0_21, %c0_22, %c0_23], %68 {strides = array<i32>} : memref<1x4x128xbf16, #tpu.memory_space<vmem>>, vector<1x4x128xbf16>,
    %69 = arith.truncf %39 : vector<4x128xf32> to vector<4x128xbf16>
    %c0_24 = arith.constant 0 : index
    %c0_25 = arith.constant 0 : index
    %c0_26 = arith.constant 0 : index
    %70 = vector.load %arg12[%c0_24, %c0_25, %c0_26] : memref<1x4x128xbf16, #tpu.memory_space<vmem>>, vector<1x4x128xbf16>
    %71 = vector.shape_cast %70 : vector<1x4x128xbf16> to vector<4x128xbf16>
    %72 = vector.shape_cast %69 : vector<4x128xbf16> to vector<1x4x128xbf16>
    tpu.vector_store %arg12[%c0_24, %c0_25, %c0_26], %72 {strides = array<i32>} : memref<1x4x128xbf16, #tpu.memory_space<vmem>>, vector<1x4x128xbf16>,
    %73 = arith.truncf %64 : vector<4x128xf32> to vector<4x128xbf16>
    %c0_27 = arith.constant 0 : index
    %c0_28 = arith.constant 0 : index
    %c0_29 = arith.constant 0 : index
    %74 = vector.load %arg13[%c0_27, %c0_28, %c0_29] : memref<1x4x128xbf16, #tpu.memory_space<vmem>>, vector<1x4x128xbf16>
    %75 = vector.shape_cast %74 : vector<1x4x128xbf16> to vector<4x128xbf16>
    %76 = vector.shape_cast %73 : vector<4x128xbf16> to vector<1x4x128xbf16>
    tpu.vector_store %arg13[%c0_27, %c0_28, %c0_29], %76 {strides = array<i32>} : memref<1x4x128xbf16, #tpu.memory_space<vmem>>, vector<1x4x128xbf16>,
    %77 = tpu.iota {dimensions = array<i32: 1>} : vector<1x128xi32>
    %c128_i32 = arith.constant 128 : i32
    %78 = arith.muli %arg1, %c128_i32 : i32
    %79 = vector.broadcast %78 : i32 to vector<1x128xi32>
    %80 = arith.addi %77, %79 : vector<1x128xi32>
    %c0_30 = arith.constant 0 : index
    %81 = memref.load %arg3[%c0_30] : memref<1xi32, #tpu.memory_space<smem>>
    %82 = vector.broadcast %81 : i32 to vector<1x128xi32>
    %83 = arith.cmpi slt, %80, %82 : vector<1x128xi32>
    %84 = arith.extui %83 : vector<1x128xi1> to vector<1x128xi32>
    %85 = arith.sitofp %84 : vector<1x128xi32> to vector<1x128xf32>
    %86 = arith.subf %8, %47 : vector<4x128xf32>
    %87 = math.absf %86 : vector<4x128xf32>
    %88 = vector.broadcast %85 : vector<1x128xf32> to vector<4x128xf32>
    %89 = arith.mulf %87, %88 : vector<4x128xf32>
    %cst_31 = arith.constant dense<0.000000e+00> : vector<4xf32>
    %90 = vector.multi_reduction <add>, %89, %cst_31 [1] : vector<4x128xf32> to vector<4xf32>
    %91 = vector.shape_cast %90 : vector<4xf32> to vector<4x1xf32>
    %c0_32 = arith.constant 0 : index
    %c0_33 = arith.constant 0 : index
    %c0_34 = arith.constant 0 : index
    %c0_35 = arith.constant 0 : index
    %92 = vector.load %arg14[%c0_32, %c0_33, %c0_34, %c0_35] : memref<1x1x4x1xf32, #tpu.memory_space<vmem>>, vector<1x1x4x1xf32>
    %93 = vector.shape_cast %92 : vector<1x1x4x1xf32> to vector<4x1xf32>
    %94 = vector.shape_cast %91 : vector<4x1xf32> to vector<1x1x4x1xf32>
    tpu.vector_store %arg14[%c0_32, %c0_33, %c0_34, %c0_35], %94 {strides = array<i32>} : memref<1x1x4x1xf32, #tpu.memory_space<vmem>>, vector<1x1x4x1xf32>,
    return
  }
  func.func @transform_0(%arg0: i32, %arg1: i32) -> (i32, i32) {
    %c0_i32 = arith.constant 0 : i32
    %c0_i32_0 = arith.constant 0 : i32
    %c0_i32_1 = arith.constant 0 : i32
    return %c0_i32, %c0_i32_0 : i32, i32
  }
  func.func @transform_1(%arg0: i32, %arg1: i32) -> i32 {
    %c0_i32 = arith.constant 0 : i32
    %c0_i32_0 = arith.constant 0 : i32
    return %c0_i32 : i32
  }
  func.func @transform_2(%arg0: i32, %arg1: i32) -> (i32, i32) {
    %c0_i32 = arith.constant 0 : i32
    %c0_i32_0 = arith.constant 0 : i32
    %c0_i32_1 = arith.constant 0 : i32
    return %c0_i32, %c0_i32_0 : i32, i32
  }
  func.func @transform_3(%arg0: i32, %arg1: i32) -> (i32, i32) {
    %c0_i32 = arith.constant 0 : i32
    %c0_i32_0 = arith.constant 0 : i32
    %c0_i32_1 = arith.constant 0 : i32
    return %c0_i32, %c0_i32_0 : i32, i32
  }
  func.func @transform_4(%arg0: i32, %arg1: i32) -> (i32, i32) {
    %c0_i32 = arith.constant 0 : i32
    %c0_i32_0 = arith.constant 0 : i32
    %c0_i32_1 = arith.constant 0 : i32
    return %c0_i32, %c0_i32_0 : i32, i32
  }
  func.func @transform_5(%arg0: i32, %arg1: i32) -> (i32, i32, i32) {
    %c0_i32 = arith.constant 0 : i32
    %c0_i32_0 = arith.constant 0 : i32
    return %arg0, %c0_i32, %arg1 : i32, i32, i32
  }
  func.func @transform_6(%arg0: i32, %arg1: i32) -> (i32, i32, i32) {
    %c0_i32 = arith.constant 0 : i32
    %c0_i32_0 = arith.constant 0 : i32
    return %arg0, %c0_i32, %arg1 : i32, i32, i32
  }
  func.func @transform_7(%arg0: i32, %arg1: i32) -> (i32, i32, i32) {
    %c0_i32 = arith.constant 0 : i32
    %c0_i32_0 = arith.constant 0 : i32
    return %arg0, %c0_i32, %arg1 : i32, i32, i32
  }
  func.func @transform_8(%arg0: i32, %arg1: i32) -> (i32, i32, i32) {
    %c0_i32 = arith.constant 0 : i32
    %c0_i32_0 = arith.constant 0 : i32
    return %arg0, %c0_i32, %arg1 : i32, i32, i32
  }
  func.func @transform_9(%arg0: i32, %arg1: i32) -> (i32, i32, i32) {
    %c0_i32 = arith.constant 0 : i32
    %c0_i32_0 = arith.constant 0 : i32
    return %arg0, %c0_i32, %arg1 : i32, i32, i32
  }
  func.func @transform_10(%arg0: i32, %arg1: i32) -> (i32, i32, i32) {
    %c0_i32 = arith.constant 0 : i32
    %c0_i32_0 = arith.constant 0 : i32
    return %arg0, %c0_i32, %arg1 : i32, i32, i32
  }
  func.func @transform_11(%arg0: i32, %arg1: i32) -> (i32, i32, i32) {
    %c0_i32 = arith.constant 0 : i32
    %c0_i32_0 = arith.constant 0 : i32
    return %arg0, %c0_i32, %arg1 : i32, i32, i32
  }
  func.func @transform_12(%arg0: i32, %arg1: i32) -> (i32, i32, i32, i32) {
    %c0_i32 = arith.constant 0 : i32
    %c0_i32_0 = arith.constant 0 : i32
    %c0_i32_1 = arith.constant 0 : i32
    return %arg0, %arg1, %c0_i32, %c0_i32_0 : i32, i32, i32, i32
  }
}

</mosaic_0001>

<bundles_post_ra>
// kernel: tpu_custom_call.1
= control target key start
LH: loop header
LB: loop body
LE: loop exit
PB: predicated region body
PF: predicated region fallthrough
CT: control target
= control target key end

     0   :  { %s2113_s0 = inlined_call_operand.vmem [shape: f32[9,2], index: 0, kind: input, shape index: {}]   ;;  %s2114_s1 = inlined_call_operand.<no memory space> [shape: s32[1], index: 1, kind: input, shape index: {}]   ;;  %s2115_s2 = inlined_call_operand.hbm [shape: f32[4,4], index: 2, kind: input, shape index: {}]   ;;  %s2116_s3 = inlined_call_operand.hbm [shape: f32[4,4], index: 3, kind: input, shape index: {}]   ;;  %s2117_s4 = inlined_call_operand.vmem [shape: f32[4,1], index: 4, kind: input, shape index: {}]   ;;  %s2118_s5 = inlined_call_operand.vmem [shape: bf16[2,4,256], index: 5, kind: input, shape index: {}]   ;;  %s2119_s6 = inlined_call_operand.vmem [shape: bf16[2,4,256], index: 6, kind: input, shape index: {}]   ;;  %s2120_s7 = inlined_call_operand.vmem [shape: bf16[2,4,256], index: 7, kind: input, shape index: {}]   ;;  %s2121_s8 = inlined_call_operand.vmem [shape: bf16[2,4,256], index: 8, kind: input, shape index: {}]   ;;  %s2122_s9 = inlined_call_operand.hbm [shape: bf16[2,4,256], index: 9, kind: output, shape index: {0}]   ;;  %s2123_s10 = inlined_call_operand.hbm [shape: bf16[2,4,256], index: 10, kind: output, shape index: {1}]   ;;  %s2124_s11 = inlined_call_operand.hbm [shape: bf16[2,4,256], index: 11, kind: output, shape index: {2}]   ;;  %s2125_s12 = inlined_call_operand.vmem [shape: f32[2,2,4,1], index: 12, kind: output, shape index: {3}]  }
   0x1   :  { %2140 = sst [smem:[#allocation28_spill]] %s2113_s0 }
   0x2   :  { %2141 = sst [smem:[#allocation29_spill]] %s2115_s2 }
   0x3   :  { %2142 = sst [smem:[#allocation30_spill]] %s2116_s3 }
   0x4   :  { %2143 = sst [smem:[#allocation31_spill]] %s2117_s4 }
   0x5   :  { %2144 = sst [smem:[#allocation32_spill]] %s2124_s11 }
   0x6   :  { %2145 = sst [smem:[#allocation33_spill]] %s2125_s12 }
   0x7   :  { %18 = sst [smem:[#allocation2]] %s2114_s1 }
   0x8   :  { %19 = vsyncpa [#allocation6], 0 }
   0x9   :  { %20 = vsyncpa [#allocation4], 0 }
   0xa   :  { %21 = vsyncpa [#allocation9], 0 }
   0xb   :  { %22 = vsyncpa [#allocation5], 0 }
   0xc   :  { %24 = vsyncpa [#allocation5 + $0x1], 0 }
   0xd   :  { %25 = vsyncpa [#allocation12], 0 }
   0xe   :  { %27 = vsyncpa [#allocation12 + $0x1], 0  ;;  %s1722_s23 = smov 0   ;;  %s1724_s24 = smov 0  }
   0xf   :  { %s1726_s25 = smov 0   ;;  %s1728_s26 = smov 0  }
  0x10   :  { %s1730_s27 = smov 0   ;;  %s1732_s28 = smov 0  }
  0x11   :  { %s1734_s1 = smov 0   ;;  %s1736_s29 = smov 0  }
  0x12 LB: > { %2146 = sst [smem:[#allocation19_spill]] %s1613_s23  ;;  %s1763_s30 = sadd.s32 4294967295, %s1641_s29   ;;  %s1641_s29 = sphi %s1736_s29, %s33_s29   ;;  %s1637_s1 = sphi %s1734_s1, %s2184_s1   ;;  %s1633_s28 = sphi %s1732_s28, %s2183_s28   ;;  %s1629_s27 = sphi %s1730_s27, %s2182_s27   ;;  %s1625_s26 = sphi %s1728_s26, %s2181_s26   ;;  %s1621_s25 = sphi %s1726_s25, %s2180_s25   ;;  %s1617_s24 = sphi %s1724_s24, %s2186_s24   ;;  %s1613_s23 = sphi %s1722_s23, %s2185_s23  }
  0x13   : > { %2147 = sst [smem:[#allocation20_spill]] %s1621_s25  ;;  %s2126_s13 = sadd.s32 4294967294, %s1641_s29  }
  0x14   : > { %2148 = sst [smem:[#allocation21_spill]] %s1633_s28  ;;  %s42_s14 = sadd.s32 1, %s1633_s28 }
  0x15   : > { %2149 = sst [smem:[#allocation22_spill]] %s1637_s1  ;;  %s45_s15 = sadd.s32 1, %s1637_s1 }
  0x16   : > { %2150 = sst [smem:[#allocation23_spill]] %s1641_s29  ;;  %p43_p0 = scmp.ge.s32.totalorder %s42_s14, 2 }
  0x17   : > { %s271_s16 = sadd.s32 1, %s1621_s25  ;;  %p281_p1 = scmp.ne.s32.totalorder %s1621_s25, %s1617_s24 }
  0x18   : > { %p282_p2 = scmp.eq.s32.totalorder %s1763_s30, 3  ;;  %s2188_s14 = smov (%p43_p0, %s42_s14), 0 }
  0x19   : > { %2151 = sst [smem:[#allocation24_spill]] %s2188_s14  ;;  %s2190_s15 = smov (!%p43_p0, %s45_s15), %s1637_s1 }
  0x1a   : > { %s267_s17 = ssub.s32 %s1633_s28, %s2188_s14  ;;  %p1777_p3 = por %p282_p2, %p281_p1 }
  0x1b   : > { %p47_p4 = scmp.ge.s32.totalorder %s2190_s15, 2  ;;  %p287_p5 = scmp.ne.s32.totalorder %s1617_s24, %s1613_s23 }
  0x1c   : > { %s2152_s18 = scalar_select %p1777_p3, 1, 0 }
  0x1d   : > { %p288_p6 = scmp.eq.s32.totalorder %s2126_s13, 3  ;;  %p1208_p7 = scmp.ge.s32.totalorder %s1641_s29, 1 }
  0x1e   : > { %s2192_s15 = smov (%p47_p4, %s2190_s15), 0  ;;  %p379_p9 = scmp.lt.s32.totalorder %s1641_s29, 5 }
  0x1f   : > { %2153 = sst [smem:[#allocation25_spill]] %s2192_s15  ;;  %p1788_p8 = por %p288_p6, %p287_p5 }
  0x20   : > { %s266_s20 = ssub.s32 %s1637_s1, %s2192_s15  ;;  %p1795_p10 = pnand %p1208_p7, %p379_p9 }
  0x21   : > { %s2154_s19 = scalar_select %p1788_p8, 1, 0 }
  0x22   : > { %s268_s21 = sor.u32 %s267_s17, %s266_s20  ;;  %p2137_p12 = scmp.eq.s32.totalorder %s1763_s30, 0 }
  0x23   : > { %2155 = sst [smem:[#allocation26_spill]] %s2154_s19  ;;  %p269_p11 = scmp.eq.s32.totalorder %s268_s21, 0 }
  0x24   : > { %s2156_s22 = scalar_select %p1795_p10, 1, 0 }
  0x25   : > { %p1304_p13 = pneg %p1795_p10  ;;  %s2157_s0 = sld [smem:[#allocation28_spill]] }
  0x26   : > { %s1806_s23 = scalar_select %p269_p11, %s1621_s25, %s271_s16  }
  0x27   : > { %p1810_p0 = pnand %p2137_p12, %p1304_p13 }
  0x28   : > { %2158 = sst [smem:[#allocation27_spill]] %s1806_s23 }
  0x29   : > { %p1816_p2 = pneg %p1810_p0 }
  0x2b   : > { %s391_s28 = sshll.u32 %s2157_s0, 4  ;;  %s392_s28 = int_to_ptr.vmem [resolvable:$true] %s391_s28 }
  0x2c   : > { %s1404_s17 = scalar_lea.vmem %s392_s28, 256  ;;  %p1412_p6 = scmp.lt.s32.totalorder %s392_s28, %s392_s28 }
  0x2d   : > { %p1405_p1 = scmp.ne.s32.totalorder %s392_s28, %s1404_s17  ;;  %p1413_p7 = scmp.lt.s32.totalorder %s1404_s17, %s1404_s17 }
  0x2f   : > { %p1407_p4 = pnand %p1816_p2, %p1405_p1  ;;  %p1414_p9 = por %p1413_p7, %p1412_p6 }
  0x31   : > { %p1408_p5 = pneg %p1407_p4 }
  0x33   : > { %p1415_p11 = pnand %p1414_p9, %p1408_p5 }
  0x35   : > { %1418 = shalt.err (!%p1415_p11)
}
  0x36   : > { %s1643_s13 = smov [#allocation3]   ;;  %s1644_s14 = smov 128  }
  0x37   : > { %s1645_s16 = smov 8   ;;  %s1646_s21 = smov [#allocation7]  }
  0x38   : > { %1307 = dma.vmem_to_smem (!%p1810_p0), %s392_s28, 256, %s1643_s13, [#allocation6], %s1644_s14, %s1644_s14, %s1645_s16  }
  0x39   : > { %s408_s0 = sshll.u32 %s1646_s21, 4  ;;  %s1647_s1 = smov [#allocation8]   ;;  %s409_s0 = int_to_ptr.vmem [resolvable:$true] %s408_s0 }
  0x3a   : > { %s419_s23 = sshll.u32 %s1647_s1, 4  ;;  %s2161_s2 = sld [smem:[#allocation29_spill]]  ;;  %s1824_s23 = int_to_ptr.vmem [resolvable:$true] %s419_s23 }
  0x40   : > { %s1419_s17 = scalar_lea.hbm %s2161_s2, 64 }
  0x41   : > { %p1420_p13 = scmp.ne.s32.totalorder %s2161_s2, %s1419_s17  ;;  %p1426_p5 = scmp.lt.u32.totalorder %s1419_s17, %s2161_s2 }
  0x43   : > { %p1422_p1 = pnand %p1420_p13, %p1816_p2 }
  0x45   : > { %p1423_p4 = pneg %p1422_p1 }
  0x47   : > { %p1428_p6 = pnand %p1426_p5, %p1423_p4 }
  0x49   : > { %1431 = shalt.err (!%p1428_p6)
}
  0x4a   : > { %s1432_s1 = scalar_lea.vmem %s409_s0, 64  ;;  %p1440_p12 = scmp.lt.s32.totalorder %s409_s0, %s409_s0 }
  0x4b   : > { %p1433_p7 = scmp.ne.s32.totalorder %s409_s0, %s1432_s1  ;;  %p1441_p8 = scmp.lt.s32.totalorder %s1432_s1, %s1432_s1 }
  0x4d   : > { %p1435_p9 = pnand %p1433_p7, %p1816_p2  ;;  %p1442_p3 = por %p1441_p8, %p1440_p12 }
  0x4f   : > { %p1436_p11 = pneg %p1435_p9 }
  0x51   : > { %p1443_p10 = pnand %p1442_p3, %p1436_p11 }
  0x53   : > { %1446 = shalt.err (!%p1443_p10)
}
  0x54   : > { %1310 = dma.hbm_to_vmem [thread:$0]  (!%p1810_p0), %s2161_s2, 64, %s409_s0, [#allocation4]  }
  0x55   : > { %s2162_s3 = sld [smem:[#allocation30_spill]] }
  0x5b   : > { %s1447_s19 = scalar_lea.hbm %s2162_s3, 64 }
  0x5c   : > { %p1448_p13 = scmp.ne.s32.totalorder %s2162_s3, %s1447_s19  ;;  %p1454_p3 = scmp.lt.u32.totalorder %s1447_s19, %s2162_s3 }
  0x5e   : > { %p1450_p1 = pnand %p1448_p13, %p1816_p2 }
  0x60   : > { %p1451_p8 = pneg %p1450_p1 }
  0x62   : > { %p1456_p10 = pnand %p1454_p3, %p1451_p8 }
  0x64   : > { %1459 = shalt.err (!%p1456_p10)
}
  0x65   : > { %s1460_s0 = scalar_lea.vmem %s1824_s23, 64  ;;  %p1468_p6 = scmp.lt.s32.totalorder %s1824_s23, %s1824_s23 }
  0x66   : > { %p1461_p12 = scmp.ne.s32.totalorder %s1824_s23, %s1460_s0  ;;  %p1469_p7 = scmp.lt.s32.totalorder %s1460_s0, %s1460_s0 }
  0x68   : > { %p1463_p4 = pnand %p1461_p12, %p1816_p2  ;;  %p1470_p9 = por %p1469_p7, %p1468_p6 }
  0x6a   : > { %p1464_p5 = pneg %p1463_p4 }
  0x6c   : > { %p1471_p11 = pnand %p1470_p9, %p1464_p5 }
  0x6e   : > { %1474 = shalt.err (!%p1471_p11)
}
  0x6f   : > { %1313 = dma.hbm_to_vmem [thread:$0]  (!%p1810_p0), %s2162_s3, 64, %s1824_s23, [#allocation9]  }
  0x70   : > { %p2163_p13 = scmp.ne.s32.totalorder %s2156_s22, 0 }
  0x71   : > { %p2164_p1 = scmp.eq.s32.totalorder (!%p2163_p13), %s1763_s30, 0 }
  0x72   : > { %479 = sbr.rel (%p2163_p13) target bundleno = 518 (0x206), region = 56 }
  0x79   : > { %1592 = dma.done.wait (%p2164_p1), [#allocation6], 256   ;;  %p2165_p2 = pmov %p2164_p1 }
  0x7a   : > { %p2166_p8 = pmov %p2164_p1 }
  0x7b   : > { %1594 = vsyncadd (%p2165_p2), [#allocation6], 4294967040 }
  0x7c   : > { %1596 = dma.done.wait (%p2166_p8), [#allocation4], 64   ;;  %p2167_p3 = pmov %p2164_p1 }
  0x7d   : > { %p2168_p10 = pmov %p2164_p1 }
  0x7e   : > { %1598 = vsyncadd (%p2167_p3), [#allocation4], 4294967232 }
  0x7f   : > { %1600 = dma.done.wait (%p2168_p10), [#allocation9], 64   ;;  %p2169_p0 = pmov %p2164_p1 }
  0x81   : > { %1602 = vsyncadd (%p2169_p0), [#allocation9], 4294967232 }
  0x82   : > { %493 = sfence }
  0x83   : > { %p575_p12 = scmp.lt.s32.totalorder %s1629_s27, 1  ;;  %p577_p4 = scmp.lt.s32.totalorder %s1625_s26, 1  ;;  %v1648_v0 = vmov 0.0   ;;  %vm1649_vm0 = vmmov 0   ;;  %v1650_v2 = vmov 0   ;;  %vm676_vm1 = vcmask 1043456  }
  0x84   : > { %1276 = vmatprep.subr.mxu0 %v1648_v0  ;;  %1278 = vmatprep.mubr.msk.f32.mxu0 %vm1649_vm0, %v1648_v0  ;;  %s1886_s23 = sld [smem:[#allocation3 + %s1629_s27]]  ;;  %s624_s15 = sshra.s32 %s1629_s27, 7  ;;  %v671_v5 = vld [vmem:[#allocation8] sm:$0xf]  ;;  %vm672_vm2 = vcmask 31744   ;;  %v854_v18 = vlaneseq }
  0x85   : > { %s576_s22 = scalar_select %p575_p12, %s1629_s27, 1  ;;  %1281 = vmatprep.subr.mxu1 %v1648_v0  ;;  %1283 = vmatprep.mubr.msk.f32.mxu1 %vm1649_vm0, %v1648_v0  ;;  %v670_v15 = vld [vmem:[#allocation7] sm:$0xf] }
  0x86   : > { %s2170_s4 = sld [smem:[#allocation31_spill]]  ;;  %1403 = vset.pattern.permute.xlu0 %v1650_v2  ;;  %s1896_s11 = sshll.u32 %s624_s15, 7  ;;  %v855_v19 = vand.u32 127, %v854_v18 }
  0x87   : > { %s578_s12 = scalar_select %p577_p4, %s1625_s26, 1 }
  0x88   : > { %s1220_s25 = sshll.u32 %s576_s22, 1  ;;  %s1257_s19 = sadd.s32 128, %s1896_s11 }
  0x89   : > { %s1898_s29 = sadd.s32 %s1220_s25, %s578_s12  ;;  %s1905_s14 = sand.u32 127, %s1629_s27 }
  0x8a   : > { %s1902_s13 = sshll.u32 %s1898_s29, 1  ;;  %s630_s12 = sadd.s32 %s1257_s19, %s1905_s14  ;;  %v660_v9 = vstv %s1886_s23 }
  0x8b   : > { %s590_s0 = scalar_lea.vmem %s2119_s6, %s1902_s13  ;;  %s598_s15 = scalar_lea.vmem %s2120_s7, %s1902_s13 }
  0x8c   : > { %v826_v1 = vld [vmem:[%s2170_s4] sm:$0xf]  ;;  %s582_s1 = scalar_lea.vmem %s2118_s5, %s1902_s13  ;;  %s631_s25 = sld [smem:[#allocation3 + %s630_s12]] }
  0x8d   : > { %829 = vperm.xlu0 %1403, %v826_v1   ;;  %v617_v3 = vld [vmem:[%s590_s0] sm:$0x3]  ;;  %s1263_s23 = sadd.s32 512, %s1896_s11  ;;  %s1265_s19 = sadd.s32 640, %s1896_s11 }
  0x8e   : > { %v618_v4 = vunpack.c.l.bf16 %v617_v3  ;;  %v1919_v6 = vld [vmem:[%s582_s1] sm:$0x3]  ;;  %s642_s16 = sadd.s32 %s1263_s23, %s1905_s14  ;;  %s646_s21 = sadd.s32 %s1265_s19, %s1905_s14 }
  0x8f   : > { %v619_v7 = vld [vmem:[%s598_s15] sm:$0x3]  ;;  %v616_v8 = vunpack.c.l.bf16 %v1919_v6  ;;  %s643_s0 = sld [smem:[#allocation3 + %s642_s16]]  ;;  %s1269_s17 = sadd.s32 896, %s1896_s11 }
  0x90   : > { %1277 = vmatpush3.msk.msra.mxu0 %vm676_vm1, %v618_v4  ;;  %v1926_v10 = vunpack.c.l.bf16 %v619_v7  ;;  %s859_s28 = sld [smem:[#allocation2]]  ;;  %s1243_s22 = sshll.u32 %s1625_s26, 7 }
  0x91   : > { %1279 = vmatmul.mubr.msk.f32.vlgmr.msra.gmra.mrb[0].mxu0 %vm672_vm2, %v671_v5  ;;  %v661_v11 = vmul.f32 %v660_v9, %v616_v8  ;;  %s647_s15 = sld [smem:[#allocation3 + %s646_s21]]  ;;  %s1267_s20 = sadd.s32 768, %s1896_s11  ;;  %v857_v20 = vstv %s1243_s22 }
  0x92   : > { %v662_v12 = vstv %s631_s25  ;;  %s1271_s1 = sadd.s32 1024, %s1896_s11  ;;  %s654_s12 = sadd.s32 %s1269_s17, %s1905_s14  ;;  %v858_v21 = vadd.s32 %v857_v20, %v855_v19 }
  0x93   : > { %v663_v13 = vmul.f32 %v662_v12, %v1926_v10  ;;  %s650_s25 = sadd.s32 %s1267_s20, %s1905_s14  ;;  %s658_s2 = sadd.s32 %s1271_s1, %s1905_s14 }
  0x94   : > { %s655_s3 = sld [smem:[#allocation3 + %s654_s12]]  ;;  %s606_s4 = scalar_lea.vmem %s2121_s8, %s1902_s13 }
  0x95   : > { %v1931_v14 = vadd.f32 %v663_v13, %v661_v11  ;;  %s1947_s23 = sld [smem:[#allocation3 + %s650_s25]]  ;;  %v833_v24 = vstv %s643_s0  ;;  %v621_v31 = vld [vmem:[%s606_s4] sm:$0x3]  ;;  %s1259_s4 = sadd.s32 256, %s1896_s11 }
  0x96   : > { %v860_v25 = vstv %s859_s28  ;;  %s1949_s19 = sld [smem:[#allocation3 + %s658_s2]]  ;;  %v622_v38 = vunpack.c.l.bf16 %v621_v31  ;;  %s548_s2 = sand.u32 1, %s1617_s24  }
  0x97   : > { %1282 = vmatpush3.msk.msra.mxu1 %vm676_vm1, %v1931_v14  ;;  %v835_v28 = vstv %s647_s15  ;;  %v834_v30 = vmul.f32 %v833_v24, %v1931_v14  ;;  %vm861_vm3 = vcmp.lt.s32.totalorder %v858_v21, %v860_v25  ;;  %s1261_s13 = sadd.s32 384, %s1896_s11  ;;  %s634_s0 = sadd.s32 %s1259_s4, %s1905_s14  ;;  %v848_v56 = vpack.c.bf16 %v1931_v14, %v1931_v14 }
  0x98   : > { %1284 = vmatmul.mubr.msk.f32.vlgmr.msra.gmra.mrb[0].mxu1 %vm672_vm2, %v670_v15  ;;  %v1244_v35 = vsel %vm861_vm3, 1.0, %v1648_v0  ;;  %s638_s17 = sadd.s32 %s1261_s13, %s1905_s14  ;;  %s1969_s15 = sshll.u32 %s548_s2, 1 }
  0x99   : > { %s639_s28 = sld [smem:[#allocation3 + %s638_s17]]  ;;  %s564_s11 = scalar_lea.vmem [#allocation13], %s1969_s15 }
  0x9a   : > { %v842_v34 = vstv %s655_s3  ;;  %s635_s3 = sld [smem:[#allocation3 + %s634_s0]]  ;;  %s1248_s14 = sshll.u32 %s1629_s27, 1 }
  0x9b   : > { %v840_v39 = vstv %s1947_s23  ;;  %v843_v42 = vmul.f32 %v842_v34, %v1931_v14  ;;  %s902_s22 = sadd.s32 %s1625_s26, %s1248_s14  ;;  %s877_s20 = sand.u32 1, %s1763_s30  }
  0x9c   : > { %v845_v40 = vstv %s1949_s19  ;;  %s1980_s1 = sshll.u32 %s902_s22, 5  ;;  %s557_s12 = scalar_lea.vmem [#allocation11], %s1969_s15 }
  0x9d   : > { %v846_v46 = vmul.f32 %v845_v40, %v622_v38  ;;  %s1989_s19 = scalar_lea.hbm %s2123_s10, %s1980_s1  ;;  %s921_s16 = sshll.u32 %s557_s12, 4  ;;  %s1991_s16 = int_to_ptr.vmem [resolvable:$true] %s921_s16 }
  0x9e   : > { %s550_s26 = scalar_lea.vmem [#allocation10], %s1969_s15  ;;  %s1996_s27 = scalar_lea.sflag [#allocation12], %s877_s20 }
  0x9f   : > { %v667_v50 = vstv %s639_s28  ;;  %849 = vst [vmem:[%s550_s26] sm:$0x3] %v848_v56  ;;  %s1475_s30 = scalar_lea.vmem %s1991_s16, 32  ;;  %p2171_p6 = scmp.ne.s32.totalorder %s2152_s18, 0 }
  0xa0   : > { %v665_v49 = vstv %s635_s3  ;;  %v668_v53 = vmul.f32 %v667_v50, %v1926_v10  ;;  %p1476_p5 = scmp.ne.s32.totalorder %s1991_s16, %s1475_s30  ;;  %s1651_s21 = smov [#allocation11]  }
  0xa1   : > { %v666_v52 = vmul.f32 %v665_v49, %v616_v8  ;;  %s1479_s4 = sshll.u32 %s1651_s21, 4  ;;  %s1480_s4 = int_to_ptr.vmem [resolvable:$false] %s1479_s4 }
  0xa2   : > { %p1477_p7 = pnand %p1476_p5, %p2171_p6  ;;  %s1481_s13 = scalar_lea.vmem %s1480_s4, 64 }
  0xa3   : > { %v669_v54 = vadd.f32 %v668_v53, %v666_v52  ;;  %p1482_p11 = scmp.lt.s32.totalorder %s1991_s16, %s1480_s4  ;;  %p1483_p13 = scmp.lt.s32.totalorder %s1481_s13, %s1475_s30 }
  0xa4   : > { %p1478_p9 = pneg %p1477_p7 }
  0xa5   : > { %v850_v55 = vpack.c.bf16 %v669_v54, %v669_v54  ;;  %p1484_p1 = por %p1483_p13, %p1482_p11 }
  0xa7   : > { %851 = vst [vmem:[%s557_s12] sm:$0x3] %v850_v55  ;;  %p1485_p2 = pnand %p1484_p1, %p1478_p9 }
 0x10c   : > { %v830_v23 = vpop.permute.xlu0 %829 }
 0x164   : > { %v746_v16 = vpop.f32.mrb[0].mxu0 }
 0x165   : > { %v1280_v17 = vpop.f32.mrb[1].mxu0 }
 0x16b   : > { %v822_v22 = vpop.f32.mrb[0].mxu1 }
 0x16c   : > { %v823_v26 = vadd.f32 %v822_v22, %v746_v16  ;;  %v1285_v27 = vpop.f32.mrb[1].mxu1 }
 0x16e   : > { %v832_v29 = vadd.f32 %v830_v23, %v823_v26 }
 0x170   : > { %v836_v32 = vmul.f32 %v835_v28, %v832_v29  ;;  %v864_v33 = vsub.f32 %v1926_v10, %v832_v29 }
 0x172   : > { %v837_v36 = vsub.f32 %v834_v30, %v836_v32  ;;  %v865_v37 = vand.u32 2147483647, %v864_v33 }
 0x174   : > { %v1242_v41 = vclamps-f32 %v837_v36, 1.0  ;;  %v866_v43 = vmul.f32 %v1244_v35, %v865_v37 }
 0x176   : > { %v841_v44 = vmul.f32 %v1242_v41, %v840_v39  ;;  %v867_v45 = vsel %vm676_vm1, %v866_v43, 0.0 }
 0x177   : > { %868 = vadd.xlane.f32.xlu0 %v867_v45 }
 0x178   : > { %v844_v47 = vadd.f32 %v843_v42, %v841_v44 }
 0x17a   : > { %v847_v48 = vadd.f32 %v846_v46, %v844_v47 }
 0x17c   : > { %v852_v51 = vpack.c.bf16 %v847_v48, %v847_v48 }
 0x17e   : > { %853 = vst [vmem:[%s564_s11] sm:$0x3] %v852_v51 }
 0x17f   : > { %1488 = shalt.err (!%p1485_p2)
}
 0x180   : > { %s1489_s0 = scalar_lea.hbm %s1989_s19, 32  ;;  %s1493_s28 = scalar_lea.hbm %s2123_s10, 128 }
 0x181   : > { %p1490_p8 = scmp.ne.s32.totalorder %s1989_s19, %s1489_s0  ;;  %p1494_p0 = scmp.lt.u32.totalorder %s1989_s19, %s2123_s10 }
 0x182   : > { %p1495_p12 = scmp.lt.u32.totalorder %s1493_s28, %s1489_s0  ;;  %p1497_p5 = scmp.lt.u32.totalorder %s1489_s0, %s1989_s19 }
 0x183   : > { %p1491_p3 = pnand %p1490_p8, %p2171_p6 }
 0x184   : > { %p1496_p4 = por %p1495_p12, %p1494_p0 }
 0x185   : > { %p1492_p10 = pneg %p1491_p3 }
 0x186   : > { %p1498_p7 = por %p1497_p5, %p1496_p4 }
 0x188   : > { %p1499_p9 = pnand %p1498_p7, %p1492_p10 }
 0x18a   : > { %1502 = shalt.err (!%p1499_p9)
}
 0x18b   : > { %1299 = dma.vmem_to_hbm [thread:$0]  (%p2171_p6), %s1991_s16, 32, %s1989_s19, %s1996_s27  }
 0x18c   : > { %s2024_s25 = scalar_lea.hbm %s2122_s9, %s1980_s1  ;;  %s906_s23 = sshll.u32 %s550_s26, 4  ;;  %s2028_s23 = int_to_ptr.vmem [resolvable:$true] %s906_s23 }
 0x18d   : > { %s2172_s4 = sld [smem:[#allocation32_spill]]  ;;  %s873_s0 = scalar_lea.sflag [#allocation5], %s548_s2 }
 0x18e   : > { %s1503_s19 = scalar_lea.vmem %s2028_s23, 32  ;;  %s1652_s16 = smov [#allocation10]  }
 0x18f   : > { %p1504_p11 = scmp.ne.s32.totalorder %s2028_s23, %s1503_s19  ;;  %s1507_s17 = sshll.u32 %s1652_s16, 4  ;;  %s1508_s17 = int_to_ptr.vmem [resolvable:$false] %s1507_s17 }
 0x190   : > { %s1509_s26 = scalar_lea.vmem %s1508_s17, 64  ;;  %p1510_p2 = scmp.lt.s32.totalorder %s2028_s23, %s1508_s17 }
 0x191   : > { %p1505_p13 = pnand %p1504_p11, %p2171_p6  ;;  %p1511_p8 = scmp.lt.s32.totalorder %s1509_s26, %s1503_s19 }
 0x193   : > { %s2034_s13 = scalar_lea.hbm %s2172_s4, %s1980_s1  ;;  %p1506_p1 = pneg %p1505_p13 }
 0x194   : > { %p1512_p3 = por %p1511_p8, %p1510_p2 }
 0x196   : > { %p1513_p10 = pnand %p1512_p3, %p1506_p1 }
 0x198   : > { %1516 = shalt.err (!%p1513_p10)
}
 0x199   : > { %s1517_s2 = scalar_lea.hbm %s2024_s25, 32  ;;  %s1521_s28 = scalar_lea.hbm %s2122_s9, 128 }
 0x19a   : > { %p1518_p0 = scmp.ne.s32.totalorder %s2024_s25, %s1517_s2  ;;  %p1522_p5 = scmp.lt.u32.totalorder %s2024_s25, %s2122_s9 }
 0x19b   : > { %p1523_p7 = scmp.lt.u32.totalorder %s1521_s28, %s1517_s2  ;;  %p1525_p11 = scmp.lt.u32.totalorder %s1517_s2, %s2024_s25 }
 0x19c   : > { %p1519_p12 = pnand %p1518_p0, %p2171_p6 }
 0x19d   : > { %p1524_p9 = por %p1523_p7, %p1522_p5 }
 0x19e   : > { %p1520_p4 = pneg %p1519_p12 }
 0x19f   : > { %p1526_p13 = por %p1525_p11, %p1524_p9 }
 0x1a1   : > { %p1527_p1 = pnand %p1526_p13, %p1520_p4 }
 0x1a3   : > { %1530 = shalt.err (!%p1527_p1)
}
 0x1a4   : > { %1298 = dma.vmem_to_hbm [thread:$0]  (%p2171_p6), %s2028_s23, 32, %s2024_s25, %s873_s0  }
 0x1a5   : > { %s936_s20 = sshll.u32 %s564_s11, 4  ;;  %s1653_s30 = smov [#allocation13]   ;;  %s937_s20 = int_to_ptr.vmem [resolvable:$true] %s936_s20 }
 0x1a6   : > { %s1531_s12 = scalar_lea.vmem %s937_s20, 32  ;;  %s1535_s21 = sshll.u32 %s1653_s30, 4  ;;  %s1536_s21 = int_to_ptr.vmem [resolvable:$false] %s1535_s21 }
 0x1a7   : > { %p1532_p2 = scmp.ne.s32.totalorder %s937_s20, %s1531_s12  ;;  %s1537_s19 = scalar_lea.vmem %s1536_s21, 64 }
 0x1a8   : > { %p1538_p10 = scmp.lt.s32.totalorder %s937_s20, %s1536_s21  ;;  %p1539_p0 = scmp.lt.s32.totalorder %s1537_s19, %s1531_s12 }
 0x1a9   : > { %p1533_p8 = pnand %p1532_p2, %p2171_p6 }
 0x1aa   : > { %p1540_p12 = por %p1539_p0, %p1538_p10 }
 0x1ab   : > { %p1534_p3 = pneg %p1533_p8 }
 0x1ad   : > { %p1541_p4 = pnand %p1540_p12, %p1534_p3 }
 0x1af   : > { %1544 = shalt.err (!%p1541_p4)
}
 0x1b0   : > { %s1545_s15 = scalar_lea.hbm %s2034_s13, 32  ;;  %s1549_s23 = scalar_lea.hbm %s2172_s4, 128 }
 0x1b1   : > { %p1546_p5 = scmp.ne.s32.totalorder %s2034_s13, %s1545_s15  ;;  %p1550_p11 = scmp.lt.u32.totalorder %s2034_s13, %s2172_s4 }
 0x1b2   : > { %p1551_p13 = scmp.lt.u32.totalorder %s1549_s23, %s1545_s15  ;;  %p1553_p2 = scmp.lt.u32.totalorder %s1545_s15, %s2034_s13 }
 0x1b3   : > { %p1547_p7 = pnand %p1546_p5, %p2171_p6 }
 0x1b4   : > { %p1552_p1 = por %p1551_p13, %p1550_p11 }
 0x1b5   : > { %p1548_p9 = pneg %p1547_p7 }
 0x1b6   : > { %p1554_p8 = por %p1553_p2, %p1552_p1 }
 0x1b8   : > { %p1555_p3 = pnand %p1554_p8, %p1548_p9 }
 0x1ba   : > { %1558 = shalt.err (!%p1555_p3)
}
 0x1bb   : > { %1300 = dma.vmem_to_hbm [thread:$0]  (%p2171_p6), %s937_s20, 32, %s2034_s13, %s1996_s27   ;;  %vm870_vm4 = vcmask 3072  }
 0x1bc   : > { %s1229_s17 = sshll.u32 %s1898_s29, 2  ;;  %s2173_s1 = sld [smem:[#allocation33_spill]] }
 0x1c2   : > { %s614_s3 = scalar_lea.vmem %s2173_s1, %s1229_s17 }
 0x204   : > { %v869_v57 = vpop.xlane.xlu0 %868 }
 0x205   : > { %871 = vst.msk [vmem:[%s614_s3] sm:$0xf] %vm870_vm4, %v869_v57 }
 0x206 PF: > { %s2174_s28 = sld [smem:[#allocation23_spill]]  ;;  %s2175_s14 = sld [smem:[#allocation19_spill]] }
 0x207   : > { %s2176_s22 = sld [smem:[#allocation26_spill]] }
 0x20c   : > { %p1330_p10 = scmp.ge.s32.totalorder %s2174_s28, 2  ;;  %s951_s12 = sand.u32 1, %s2175_s14  }
 0x20d   : > { %p2177_p0 = scmp.ne.s32.totalorder %s2176_s22, 0  ;;  %s952_s18 = scalar_lea.sflag [#allocation5], %s951_s12 }
 0x20f   : > { %p1315_p12 = pnand %p1330_p10, %p2177_p0 }
 0x211   : > { %1604 = dma.done.wait (!%p1315_p12), %s952_s18, 32  }
 0x212   : > { %1606 = vsyncadd (!%p1315_p12), %s952_s18, 4294967264  ;;  %s2178_s29 = sadd.s32 4294967294, %s2174_s28  }
 0x213   : > { %s960_s27 = sand.u32 1, %s2178_s29  }
 0x214   : > { %s961_s13 = scalar_lea.sflag [#allocation12], %s960_s27 }
 0x215   : > { %1608 = dma.done.wait (!%p1315_p12), %s961_s13, 64  }
 0x216   : > { %1610 = vsyncadd (!%p1315_p12), %s961_s13, 4294967232  ;;  %s33_s29 = sadd.s32 1, %s2174_s28   ;;  %s2179_s20 = sld [smem:[#allocation20_spill]] }
 0x217   : > { %p30_p6 = scmp.ge.s32.totalorder %s33_s29, 6   ;;  %s2180_s25 = sld [smem:[#allocation27_spill]] }
 0x218   : > { %s2181_s26 = sld [smem:[#allocation21_spill]]  ;;  %s2182_s27 = sld [smem:[#allocation22_spill]] }
 0x219   : > { %s2183_s28 = sld [smem:[#allocation24_spill]]  ;;  %s2184_s1 = sld [smem:[#allocation25_spill]] }
 0x21a   : > { %s2185_s23 = smov %s1617_s24  ;;  %32 = sbr.rel (!%p30_p6) target bundleno = 18 (0x12), region = 158 }
 0x21c   : > { %s2186_s24 = smov %s2179_s20 }
 0x221   :  { %986 = vsyncpa [#allocation4], 1 }
 0x222   :  { %988 = vsyncpa [#allocation4 + $0x1], 1 }
 0x223   :  { %989 = vsyncpa [#allocation9], 1 }
 0x224   :  { %990 = vsyncpa [#allocation5], 1 }
 0x225   :  { %992 = vsyncpa [#allocation5 + $0x1], 1 }
 0x226   :  { %993 = vsyncpa [#allocation12], 1 }
 0x227   :  { %995 = vsyncpa [#allocation12 + $0x1], 1 }
 0x228   :  { %996 = vsyncpa [#allocation6], 1 }
 0x229   :  { %998 = vsyncpa [#allocation6 + $0x1], 1 }

</bundles_post_ra>
